<compile_context>
chip_gen: v7x
topology: tpu7x:2x2x1
jax: 0.10.0
libtpu: 0.0.40
codegen_flags: <defaults>
</compile_context>

<pallas_src>
import jax
import jax.numpy as jnp
from jax.experimental import pallas as pl
from jax.experimental.pallas import tpu as pltpu

_SUB = 8       # sublanes per vreg tile
_LANES = 128   # lanes per vreg tile
_TILE = _SUB * _LANES                     # 1024 elements per (8, 128) tile
_TARGET_BLOCK_BYTES = 8 * 1024 * 1024     # combined x+t bytes per grid step


def _cdiv(a, b):
    return -(-a // b)


def _bce_logits_f32(x, t):
    # Numerically stable BCE-with-logits (matches PyTorch):
    #   max(x, 0) - x*t + log1p(exp(-|x|))
    x = x.astype(jnp.float32)
    t = t.astype(jnp.float32)
    return jnp.maximum(x, 0.0) - x * t + jnp.log1p(jnp.exp(-jnp.abs(x)))


def _make_kernel(k_blocks, num_blocks, block_tiles, last_valid_tiles):
    has_partial = last_valid_tiles != block_tiles   # static (Python) decision

    def kernel(x_ref, t_ref, out_ref):
        p = pl.program_id(0)
        k = pl.program_id(1)

        @pl.when(k == 0)
        def _():
            out_ref[...] = jnp.zeros_like(out_ref)

        bce = _bce_logits_f32(x_ref[...], t_ref[...])

        if has_partial:
            # Only the very last block (flat index num_blocks - 1) extends past
            # the array; Pallas fills the out-of-range tiles with unspecified
            # data, so mask them out -- but only on that one block (pl.when),
            # keeping the hot path mask-free.
            block_idx = p * k_blocks + k
            is_last = block_idx == num_blocks - 1

            @pl.when(is_last)
            def _():
                i0 = jax.lax.broadcasted_iota(jnp.int32, bce.shape, 0)
                masked = jnp.where(i0 < last_valid_tiles, bce, 0.0)
                out_ref[...] += jnp.sum(masked, axis=0)

            @pl.when(jnp.logical_not(is_last))
            def _():
                out_ref[...] += jnp.sum(bce, axis=0)
        else:
            out_ref[...] += jnp.sum(bce, axis=0)

    return kernel


def multiclass_bce(inputs, targets, smooth=1, *, block_tiles=None):
    """inputs, targets: (B, C, H, W) float arrays (any dtype). Scalar f32 loss.

    `smooth` is accepted for API parity with the PyTorch module, which also
    never uses it.  `block_tiles` optionally overrides the per-step tile count
    (used for testing the multi-block / partial-block paths at small shapes).
    """
    del smooth  # unused -- matches the reference module
    B, C, H, W = inputs.shape
    n = B * H * W            # per-channel mean denominator (same for every c)
    total = B * C * H * W

    # Natural layout: no transpose, no dtype upcast, no padded copies.
    x_flat = inputs.reshape(-1)
    t_flat = targets.reshape(-1)

    tiles_full = total // _TILE
    main_elems = tiles_full * _TILE
    rem = total - main_elems            # < 1024 elements, handled in wrapper

    loss_sum = jnp.float32(0.0)

    if tiles_full > 0:
        if block_tiles is None:
            bytes_per_tile = _TILE * (inputs.dtype.itemsize + targets.dtype.itemsize)
            block_tiles = max(8, _TARGET_BLOCK_BYTES // bytes_per_tile)
        block_tiles = max(1, min(int(block_tiles), tiles_full))

        num_blocks = _cdiv(tiles_full, block_tiles)
        last_valid_tiles = tiles_full - (num_blocks - 1) * block_tiles

        # Two parallel slices only when they cover the blocks exactly (keeps
        # v7x's two TensorCores busy; a nominal parallel axis is free on
        # single-core v5e/v6e and never forces extra padded work).
        P = 2 if (num_blocks >= 2 and num_blocks % 2 == 0) else 1
        K = num_blocks // P

        xm = x_flat if rem == 0 else x_flat[:main_elems]
        tm = t_flat if rem == 0 else t_flat[:main_elems]
        x3 = xm.reshape(tiles_full, _SUB, _LANES)
        t3 = tm.reshape(tiles_full, _SUB, _LANES)

        kernel = _make_kernel(K, num_blocks, block_tiles, last_valid_tiles)

        in_map = lambda p, k: (p * K + k, 0, 0)
        out_map = lambda p, k: (p, 0)

        cost = pl.CostEstimate(
            flops=6 * main_elems,
            transcendentals=2 * main_elems,
            bytes_accessed=main_elems
            * (x3.dtype.itemsize + t3.dtype.itemsize)
            + P * _SUB * _LANES * 4,
        )

        partials = pl.pallas_call(
            kernel,
            out_shape=jax.ShapeDtypeStruct((P * _SUB, _LANES), jnp.float32),
            grid_spec=pltpu.PrefetchScalarGridSpec(
                num_scalar_prefetch=0,
                grid=(P, K),
                in_specs=[
                    pl.BlockSpec((block_tiles, _SUB, _LANES), in_map),
                    pl.BlockSpec((block_tiles, _SUB, _LANES), in_map),
                ],
                out_specs=pl.BlockSpec((_SUB, _LANES), out_map),
            ),
            compiler_params=pltpu.CompilerParams(
                dimension_semantics=("parallel", "arbitrary"),
                vmem_limit_bytes=40 << 20,
            ),
            cost_estimate=cost,
        )(x3, t3)

        # Single cross-lane reduce in the wrapper.
        loss_sum = loss_sum + jnp.sum(partials)

    if rem > 0:
        # Sub-tile remainder (< 1024 elements): trivial plain-jnp contribution.
        loss_sum = loss_sum + jnp.sum(
            _bce_logits_f32(x_flat[main_elems:], t_flat[main_elems:])
        )

    return loss_sum / jnp.float32(n)


def _reference_loss(inputs, targets):
    bce = _bce_logits_f32(inputs, targets)
    # per-channel mean over (B, H, W), summed over channels
    return jnp.sum(jnp.mean(bce, axis=(0, 2, 3)))


if __name__ == "__main__":
    key = jax.random.PRNGKey(0)
    k1, k2, k3, k4 = jax.random.split(key, 4)

    # 1) Primary small demo: B=2, C=4, H=W=16, f32 (tile-aligned, single block).
    B, C, H, W = 2, 4, 16, 16
    logits = jax.random.normal(k1, (B, C, H, W), dtype=jnp.float32)
    targets = (jax.random.uniform(k2, (B, C, H, W)) > 0.5).astype(jnp.float32)
    loss = jax.block_until_ready(multiclass_bce(logits, targets))
    ref = jax.block_until_ready(_reference_loss(logits, targets))
    assert jnp.allclose(loss, ref, rtol=1e-5, atol=1e-5), (loss, ref)

    # 2) Sub-tile shape (< 1024 elements): pure wrapper remainder path.
    logits2 = jax.random.normal(k3, (2, 3, 7, 9), dtype=jnp.float32)
    targets2 = (jax.random.uniform(k4, (2, 3, 7, 9)) > 0.5).astype(jnp.float32)
    loss2 = jax.block_until_ready(multiclass_bce(logits2, targets2))
    ref2 = jax.block_until_ready(_reference_loss(logits2, targets2))
    assert jnp.allclose(loss2, ref2, rtol=1e-5, atol=1e-5), (loss2, ref2)

    # 3) Non-tile-aligned multi-tile shape: kernel prefix + wrapper tail.
    logits6 = jax.random.normal(k1, (2, 3, 33, 17), dtype=jnp.float32)
    targets6 = (jax.random.uniform(k2, (2, 3, 33, 17)) > 0.5).astype(jnp.float32)
    loss6 = jax.block_until_ready(multiclass_bce(logits6, targets6))
    ref6 = jax.block_until_ready(_reference_loss(logits6, targets6))
    assert jnp.allclose(loss6, ref6, rtol=1e-5, atol=1e-5), (loss6, ref6)

    # 4) bf16 inputs in native dtype (no wrapper upcast), default block size.
    shape3 = (4, 4, 160, 256)
    logits3 = jax.random.normal(k3, shape3, dtype=jnp.bfloat16)
    targets3 = (jax.random.uniform(k4, shape3) > 0.5).astype(jnp.bfloat16)
    ref3 = jax.block_until_ready(
        _reference_loss(logits3.astype(jnp.float32), targets3.astype(jnp.float32))
    )
    loss3 = jax.block_until_ready(multiclass_bce(logits3, targets3))
    assert jnp.allclose(loss3, ref3, rtol=1e-3, atol=1e-3), (loss3, ref3)

    # 5) Same data, forced small blocks -> 7 blocks with a PARTIAL last block:
    #    exercises K accumulation + pl.when-gated mask.
    loss4 = jax.block_until_ready(multiclass_bce(logits3, targets3, block_tiles=96))
    assert jnp.allclose(loss4, ref3, rtol=1e-3, atol=1e-3), (loss4, ref3)

    # 6) Same data, 8 even blocks -> P=2 "parallel" outer axis (megacore path).
    loss5 = jax.block_until_ready(multiclass_bce(logits3, targets3, block_tiles=80))
    assert jnp.allclose(loss5, ref3, rtol=1e-3, atol=1e-3), (loss5, ref3)

    print("KERNEL_OK")
</pallas_src>

<mosaic_0001>
module attributes {stable_mosaic.version = 11 : i64} {
  func.func @kernel(%arg0: i32, %arg1: i32, %arg2: memref<2x8x128xf32, #tpu.memory_space<vmem>>, %arg3: memref<2x8x128xf32, #tpu.memory_space<vmem>>, %arg4: memref<8x128xf32, #tpu.memory_space<vmem>>) attributes {dimension_semantics = [#tpu.dimension_semantics<parallel>, #tpu.dimension_semantics<arbitrary>], iteration_bounds = array<i64: 1, 1>, scalar_prefetch = 0 : i64, scratch_operands = 0 : i64, tpu.core_type = #tpu.core_type<tc>, window_params = [{transform_indices = @transform_0, window_bounds = array<i64: 2, 8, 128>}, {transform_indices = @transform_1, window_bounds = array<i64: 2, 8, 128>}, {transform_indices = @transform_2, window_bounds = array<i64: 8, 128>}]} {
    %c0_i32 = arith.constant 0 : i32
    %0 = arith.cmpi eq, %arg1, %c0_i32 : i32
    %1 = arith.extui %0 : i1 to i32
    %c0_i32_0 = arith.constant 0 : i32
    %2 = arith.cmpi ne, %1, %c0_i32_0 : i32
    scf.if %2 {
      %cst_12 = arith.constant 0.000000e+00 : f32
      %19 = vector.broadcast %cst_12 : f32 to vector<8x128xf32>
      %c0_13 = arith.constant 0 : index
      %c0_14 = arith.constant 0 : index
      %20 = vector.load %arg4[%c0_13, %c0_14] : memref<8x128xf32, #tpu.memory_space<vmem>>, vector<8x128xf32>
      tpu.vector_store %arg4[%c0_13, %c0_14], %19 {strides = array<i32>} : memref<8x128xf32, #tpu.memory_space<vmem>>, vector<8x128xf32>,
    } else {
    }
    %c0 = arith.constant 0 : index
    %c0_1 = arith.constant 0 : index
    %c0_2 = arith.constant 0 : index
    %3 = vector.load %arg2[%c0, %c0_1, %c0_2] : memref<2x8x128xf32, #tpu.memory_space<vmem>>, vector<2x8x128xf32>
    %c0_3 = arith.constant 0 : index
    %c0_4 = arith.constant 0 : index
    %c0_5 = arith.constant 0 : index
    %4 = vector.load %arg3[%c0_3, %c0_4, %c0_5] : memref<2x8x128xf32, #tpu.memory_space<vmem>>, vector<2x8x128xf32>
    %cst = arith.constant 0.000000e+00 : f32
    %5 = vector.broadcast %cst : f32 to vector<2x8x128xf32>
    %6 = arith.maximumf %3, %5 : vector<2x8x128xf32>
    %7 = arith.mulf %3, %4 : vector<2x8x128xf32>
    %8 = arith.subf %6, %7 : vector<2x8x128xf32>
    %9 = math.absf %3 : vector<2x8x128xf32>
    %cst_6 = arith.constant 0.000000e+00 : f32
    %10 = vector.broadcast %cst_6 : f32 to vector<2x8x128xf32>
    %11 = arith.subf %10, %9 : vector<2x8x128xf32>
    %12 = math.exp %11 : vector<2x8x128xf32>
    %13 = math.log1p %12 : vector<2x8x128xf32>
    %14 = arith.addf %8, %13 : vector<2x8x128xf32>
    %c0_7 = arith.constant 0 : index
    %c0_8 = arith.constant 0 : index
    %15 = vector.load %arg4[%c0_7, %c0_8] : memref<8x128xf32, #tpu.memory_space<vmem>>, vector<8x128xf32>
    %cst_9 = arith.constant dense<0.000000e+00> : vector<8x128xf32>
    %16 = vector.multi_reduction <add>, %14, %cst_9 [0] : vector<2x8x128xf32> to vector<8x128xf32>
    %17 = arith.addf %15, %16 : vector<8x128xf32>
    %c0_10 = arith.constant 0 : index
    %c0_11 = arith.constant 0 : index
    %18 = vector.load %arg4[%c0_10, %c0_11] : memref<8x128xf32, #tpu.memory_space<vmem>>, vector<8x128xf32>
    tpu.vector_store %arg4[%c0_10, %c0_11], %17 {strides = array<i32>} : memref<8x128xf32, #tpu.memory_space<vmem>>, vector<8x128xf32>,
    return
  }
  func.func @transform_0(%arg0: i32, %arg1: i32) -> (i32, i32, i32) {
    %c1_i32 = arith.constant 1 : i32
    %0 = arith.muli %arg0, %c1_i32 : i32
    %1 = arith.addi %0, %arg1 : i32
    %c0_i32 = arith.constant 0 : i32
    %c0_i32_0 = arith.constant 0 : i32
    %c0_i32_1 = arith.constant 0 : i32
    return %1, %c0_i32, %c0_i32_0 : i32, i32, i32
  }
  func.func @transform_1(%arg0: i32, %arg1: i32) -> (i32, i32, i32) {
    %c1_i32 = arith.constant 1 : i32
    %0 = arith.muli %arg0, %c1_i32 : i32
    %1 = arith.addi %0, %arg1 : i32
    %c0_i32 = arith.constant 0 : i32
    %c0_i32_0 = arith.constant 0 : i32
    %c0_i32_1 = arith.constant 0 : i32
    return %1, %c0_i32, %c0_i32_0 : i32, i32, i32
  }
  func.func @transform_2(%arg0: i32, %arg1: i32) -> (i32, i32) {
    %c0_i32 = arith.constant 0 : i32
    %c0_i32_0 = arith.constant 0 : i32
    return %arg0, %c0_i32 : i32, i32
  }
}

</mosaic_0001>

<bundles_post_ra>
// kernel: tpu_custom_call.1
= control target key start
LH: loop header
LB: loop body
LE: loop exit
PB: predicated region body
PF: predicated region fallthrough
CT: control target
= control target key end

     0   :  { %7 = vsyncpa [#allocation3], 0  ;;  %s257_s0 = inlined_call_operand.hbm [shape: f32[2,8,128], index: 0, kind: input, shape index: {}]   ;;  %s258_s1 = inlined_call_operand.hbm [shape: f32[2,8,128], index: 1, kind: input, shape index: {}]   ;;  %s259_s2 = inlined_call_operand.hbm [shape: f32[8,128], index: 2, kind: output, shape index: {}]  }
   0x1   :  { %8 = vsyncpa [#allocation6], 0 }
   0x2   :  { %9 = vsyncpa [#allocation4], 0  ;;  %s201_s9 = smov [#allocation2]   ;;  %s129_s13 = scalar_lea.hbm %s257_s0, 256 }
   0x3   :  { %s19_s10 = sshll.u32 %s201_s9, 4  ;;  %p130_p0 = scmp.ne.s32.totalorder %s257_s0, %s129_s13  ;;  %s20_s10 = int_to_ptr.vmem [resolvable:$true] %s19_s10 }
   0x4   :  { %p133_p1 = scmp.lt.u32.totalorder %s129_s13, %s257_s0 }
   0x6   :  { %p135_p2 = pnand %p133_p1, %p130_p0 }
   0x8   :  { %138 = shalt.err (!%p135_p2)
}
   0x9   :  { %s139_s18 = scalar_lea.vmem %s20_s10, 256  ;;  %p144_p4 = scmp.lt.s32.totalorder %s20_s10, %s20_s10 }
   0xa   :  { %p140_p3 = scmp.ne.s32.totalorder %s20_s10, %s139_s18  ;;  %p145_p5 = scmp.lt.s32.totalorder %s139_s18, %s139_s18 }
   0xc   :  { %p146_p6 = por %p145_p5, %p144_p4 }
   0xe   :  { %p147_p7 = pnand %p146_p6, %p140_p3 }
  0x10   :  { %150 = shalt.err (!%p147_p7)
}
  0x11   :  { %s202_s19 = smov 128   ;;  %s203_s20 = smov 8  }
  0x12   :  { %25 = dma.hbm_to_vmem [thread:$0]  %s257_s0, 256, %s20_s10, [#allocation3], %s202_s19, %s202_s19, %s203_s20  }
  0x13   :  { %s204_s23 = smov [#allocation5]   ;;  %s151_s27 = scalar_lea.hbm %s258_s1, 256 }
  0x14   :  { %s35_s24 = sshll.u32 %s204_s23, 4  ;;  %p152_p8 = scmp.ne.s32.totalorder %s258_s1, %s151_s27  ;;  %s36_s24 = int_to_ptr.vmem [resolvable:$true] %s35_s24 }
  0x15   :  { %p155_p9 = scmp.lt.u32.totalorder %s151_s27, %s258_s1 }
  0x17   :  { %p157_p10 = pnand %p155_p9, %p152_p8 }
  0x19   :  { %160 = shalt.err (!%p157_p10)
}
  0x1a   :  { %s161_s4 = scalar_lea.vmem %s36_s24, 256  ;;  %p166_p12 = scmp.lt.s32.totalorder %s36_s24, %s36_s24 }
  0x1b   :  { %p162_p11 = scmp.ne.s32.totalorder %s36_s24, %s161_s4  ;;  %p167_p13 = scmp.lt.s32.totalorder %s161_s4, %s161_s4 }
  0x1d   :  { %p168_p0 = por %p167_p13, %p166_p12 }
  0x1f   :  { %p169_p1 = pnand %p168_p0, %p162_p11 }
  0x21   :  { %172 = shalt.err (!%p169_p1)
}
  0x22   :  { %41 = dma.hbm_to_vmem [thread:$0]  %s258_s1, 256, %s36_s24, [#allocation6], %s202_s19, %s202_s19, %s203_s20  }
  0x23   :  { %195 = dma.done.wait [#allocation3], 256  }
  0x24   :  { %196 = vsyncadd [#allocation3], 4294967040 }
  0x25   :  { %197 = dma.done.wait [#allocation6], 256  }
  0x26   :  { %198 = vsyncadd [#allocation6], 4294967040  ;;  %v57_v0 = vld [vmem:[#allocation2] sm:$0xff]  ;;  %v58_v1 = vld [vmem:[#allocation2 + $0x8] sm:$0xff]  ;;  %s205_s1 = smov [#allocation7]  }
  0x27   :  { %v67_v2 = vand.u32 2147483647, %v57_v0  ;;  %v68_v3 = vand.u32 2147483647, %v58_v1  ;;  %v59_v14 = vld [vmem:[#allocation5] sm:$0xff]  ;;  %v60_v15 = vld [vmem:[#allocation5 + $0x8] sm:$0xff] }
  0x28   :  { %v61_v17 = vmax.f32 %v57_v0, 0.0  ;;  %v63_v18 = vmul.f32 %v59_v14, %v57_v0  ;;  %v62_v21 = vmax.f32 %v58_v1, 0.0  ;;  %v64_v22 = vmul.f32 %v60_v15, %v58_v1  ;;  %s105_s6 = sshll.u32 %s205_s1, 4  ;;  %s106_s6 = int_to_ptr.vmem [resolvable:$true] %s105_s6 }
  0x29   :  { %v69_v4 = vsub.f32 0.0, %v67_v2  ;;  %v70_v5 = vsub.f32 0.0, %v68_v3  ;;  %s173_s7 = scalar_lea.vmem %s106_s6, 128  ;;  %p178_p3 = scmp.lt.s32.totalorder %s106_s6, %s106_s6 }
  0x2a   :  { %v65_v26 = vsub.f32 %v61_v17, %v63_v18  ;;  %v66_v29 = vsub.f32 %v62_v21, %v64_v22  ;;  %p174_p2 = scmp.ne.s32.totalorder %s106_s6, %s173_s7  ;;  %p179_p4 = scmp.lt.s32.totalorder %s173_s7, %s173_s7 }
  0x2b   :  { %v71_v6 = vmul.f32 1.442695, %v69_v4  ;;  %v73_v7 = vmul.f32 1.442695, %v70_v5 }
  0x2c   :  { %p180_p5 = por %p179_p4, %p178_p3 }
  0x2d   :  { %121 = vpow2.f32 %v71_v6 }
  0x2e   :  { %123 = vpow2.f32 %v73_v7  ;;  %p181_p6 = pnand %p180_p5, %p174_p2 }
  0x37   :  { %v122_v8 = vpop.eup %121 }
  0x38   :  { %v124_v9 = vpop.eup %123  ;;  %v75_v10 = vadd.f32 1.0, %v122_v8  ;;  %v78_v12 = vmul.f32 -0.5, %v122_v8  ;;  %v81_v19 = vand.u32 2147483647, %v122_v8 }
  0x39   :  { %v84_v11 = vadd.f32 1.0, %v124_v9  ;;  %v87_v13 = vmul.f32 -0.5, %v124_v9  ;;  %v90_v23 = vand.u32 2147483647, %v124_v9 }
  0x3a   :  { %125 = vlog2.f32 %v75_v10  ;;  %v79_v16 = vadd.f32 1.0, %v78_v12  ;;  %vm82_vm0 = vcmp.lt.f32.partialorder %v81_v19, 0.0004427343 }
  0x3b   :  { %127 = vlog2.f32 %v84_v11  ;;  %v88_v20 = vadd.f32 1.0, %v87_v13  ;;  %vm91_vm1 = vcmp.lt.f32.partialorder %v90_v23, 0.0004427343 }
  0x3c   :  { %v80_v24 = vmul.f32 %v122_v8, %v79_v16 }
  0x3d   :  { %v89_v27 = vmul.f32 %v124_v9, %v88_v20 }
  0x44   :  { %v126_v25 = vpop.eup %125 }
  0x45   :  { %v128_v28 = vpop.eup %127  ;;  %v77_v30 = vmul.f32 0.6931472, %v126_v25 }
  0x46   :  { %v86_v31 = vmul.f32 0.6931472, %v128_v28 }
  0x47   :  { %v83_v32 = vsel %vm82_vm0, %v80_v24, %v77_v30 }
  0x48   :  { %v92_v33 = vsel %vm91_vm1, %v89_v27, %v86_v31  ;;  %v93_v34 = vadd.f32 %v83_v32, %v65_v26 }
  0x49   :  { %v94_v35 = vadd.f32 %v92_v33, %v66_v29 }
  0x4b   :  { %v96_v36 = vadd.f32 %v94_v35, %v93_v34 }
  0x4d   :  { %98 = vst [vmem:[#allocation7] sm:$0xff] %v96_v36 }
  0x4e   :  { %184 = shalt.err (!%p181_p6)
}
  0x4f   :  { %s185_s10 = scalar_lea.hbm %s259_s2, 128 }
  0x50   :  { %p186_p7 = scmp.ne.s32.totalorder %s259_s2, %s185_s10  ;;  %p189_p8 = scmp.lt.u32.totalorder %s185_s10, %s259_s2 }
  0x52   :  { %p191_p9 = pnand %p189_p8, %p186_p7 }
  0x54   :  { %194 = shalt.err (!%p191_p9)
}
  0x55   :  { %108 = dma.vmem_to_hbm [thread:$0]  %s106_s6, 128, %s259_s2, [#allocation4]  }
  0x56   :  { %199 = dma.done.wait [#allocation4], 128  }
  0x57   :  { %200 = vsyncadd [#allocation4], 4294967168 }
  0x58   :  { %112 = vsyncpa [#allocation3], 1 }
  0x59   :  { %113 = vsyncpa [#allocation6], 1 }
  0x5a   :  { %114 = vsyncpa [#allocation4], 1 }

</bundles_post_ra>
